<compile_context>
chip_gen: v7x
topology: tpu7x:2x2x1
jax: 0.10.0
libtpu: 0.0.40
codegen_flags: <defaults>
</compile_context>

<pallas_src>
import functools

import jax
import jax.numpy as jnp
from jax import lax
from jax.experimental import pallas as pl
from jax.experimental.pallas import tpu as pltpu

NEG_SLOPE = 0.2
BN_EPS = 1e-5
VMEM_LIMIT = 40 * 1024 * 1024      # < physical VMEM on v5e/v6e (128 MiB) and v7x (64 MiB)


def _round_up(x, m):
    return ((x + m - 1) // m) * m


def _pick_tm(m, kp, np_, out_bytes, cap=512):
    """Largest M tile (multiple of 8, <= cap) whose double-buffered working set stays
    inside a conservative scoped-VMEM budget on every TPU generation."""
    tm = min(cap, _round_up(m, 8))
    budget = 24 * 1024 * 1024
    while tm > 8:
        need = (2 * tm * kp * 2            # x tile, double buffered, bf16
                + 2 * kp * np_ * 2         # resident weight, bf16 (2 buffers)
                + 2 * tm * np_ * out_bytes  # output tile, double buffered
                + tm * np_ * 4)            # headroom for the f32 dot result
        if need <= budget:
            break
        tm = max(8, (tm // 2) // 8 * 8)
    return tm


def _pick_divisor_tile(m, cap):
    for t in (4096, 2048, 1024, 512, 256, 128, 64, 32, 16, 8):
        if t <= cap and m % t == 0:
            return t
    return 8


# ---------------------------------------------------------------------------
# Pallas kernels
# ---------------------------------------------------------------------------
def _conv_bias_act_kernel(x_ref, w_ref, b_ref, o_ref, *, act):
    """(tm, K) @ (K, Np) on the MXU (weight resident), fused bias (+LeakyReLU)."""
    y = jnp.dot(x_ref[...], w_ref[...], preferred_element_type=jnp.float32)
    y = y + b_ref[...]                               # (1, Np) broadcast over rows
    if act:
        y = jnp.where(y >= 0, y, NEG_SLOPE * y)      # LeakyReLU(0.2)
    o_ref[...] = y.astype(o_ref.dtype)


def _conv_stats_kernel(x_ref, w_ref, o_ref, sum_ref, sq_ref):
    """Conv GEMM for BatchNorm layers (bias=False): also emits this M tile's
    per-channel sum / sum-of-squares (fused BN statistics, no cross-tile state)."""
    y = jnp.dot(x_ref[...], w_ref[...], preferred_element_type=jnp.float32)
    o_ref[...] = y.astype(o_ref.dtype)
    s1 = jnp.sum(y, axis=0, keepdims=True)           # (1, Np); padded rows are zero
    s2 = jnp.sum(y * y, axis=0, keepdims=True)
    npad = s1.shape[1]
    # Per-tile partial sums, written as a lane-dense (8, Np) block (row 0 is used).
    sum_ref[...] = jnp.broadcast_to(s1, (8, npad))
    sq_ref[...] = jnp.broadcast_to(s2, (8, npad))


def _affine_act_kernel(x_ref, scale_ref, shift_ref, o_ref):
    """Fused BatchNorm (pre-folded into per-channel scale/shift) + LeakyReLU(0.2)."""
    y = x_ref[...].astype(jnp.float32) * scale_ref[...] + shift_ref[...]
    o_ref[...] = jnp.where(y >= 0, y, NEG_SLOPE * y).astype(o_ref.dtype)


# ---------------------------------------------------------------------------
# Pallas wrappers
# ---------------------------------------------------------------------------
def conv_gemm_bias_act(cols, w2, bias, *, act, out_dtype):
    """(M, K) @ (K, Np) + bias with optional LeakyReLU. K, Np are 128-aligned by
    construction; returns the (Mp, Np) padded result (caller slices)."""
    m, k = cols.shape
    kw_, np_ = w2.shape
    assert kw_ == k and k % 128 == 0 and np_ % 128 == 0
    tm = _pick_tm(m, k, np_, jnp.dtype(out_dtype).itemsize)
    mp = _round_up(m, tm)
    x = cols.astype(jnp.bfloat16)
    if mp != m:                                      # at most one sub-tile of zero rows
        x = jnp.pad(x, ((0, mp - m), (0, 0)))
    return pl.pallas_call(
        functools.partial(_conv_bias_act_kernel, act=act),
        out_shape=jax.ShapeDtypeStruct((mp, np_), out_dtype),
        grid=(mp // tm,),
        in_specs=[
            pl.BlockSpec((tm, k), lambda i: (i, 0)),
            pl.BlockSpec((k, np_), lambda i: (0, 0)),    # weight resident across M tiles
            pl.BlockSpec((1, np_), lambda i: (0, 0)),
        ],
        out_specs=pl.BlockSpec((tm, np_), lambda i: (i, 0)),
        compiler_params=pltpu.CompilerParams(
            dimension_semantics=("parallel",),
            vmem_limit_bytes=VMEM_LIMIT),
    )(x, w2.astype(jnp.bfloat16), bias.reshape(1, np_).astype(jnp.float32))


def conv_gemm_stats(cols, w2, *, out_dtype=jnp.bfloat16):
    """Conv GEMM without bias; also returns per-channel (sum, sum_sq) over all M rows,
    accumulated per-M-tile in the kernel and reduced here (M axis stays parallel)."""
    m, k = cols.shape
    kw_, np_ = w2.shape
    assert kw_ == k and k % 128 == 0 and np_ % 128 == 0
    tm = _pick_tm(m, k, np_, jnp.dtype(out_dtype).itemsize)
    mp = _round_up(m, tm)
    x = cols.astype(jnp.bfloat16)
    if mp != m:                                      # zero rows -> contribute 0 to sums
        x = jnp.pad(x, ((0, mp - m), (0, 0)))
    tiles = mp // tm
    y, s1_t, s2_t = pl.pallas_call(
        _conv_stats_kernel,
        out_shape=(
            jax.ShapeDtypeStruct((mp, np_), out_dtype),
            jax.ShapeDtypeStruct((tiles * 8, np_), jnp.float32),
            jax.ShapeDtypeStruct((tiles * 8, np_), jnp.float32),
        ),
        grid=(tiles,),
        in_specs=[
            pl.BlockSpec((tm, k), lambda i: (i, 0)),
            pl.BlockSpec((k, np_), lambda i: (0, 0)),    # weight resident across M tiles
        ],
        out_specs=(
            pl.BlockSpec((tm, np_), lambda i: (i, 0)),
            pl.BlockSpec((8, np_), lambda i: (i, 0)),    # per-tile partial sums
            pl.BlockSpec((8, np_), lambda i: (i, 0)),
        ),
        compiler_params=pltpu.CompilerParams(
            dimension_semantics=("parallel",),
            vmem_limit_bytes=VMEM_LIMIT),
    )(x, w2.astype(jnp.bfloat16))
    s1 = s1_t.reshape(tiles, 8, np_)[:, 0, :].sum(axis=0)
    s2 = s2_t.reshape(tiles, 8, np_)[:, 0, :].sum(axis=0)
    return y, s1, s2


def affine_act(x, scale, shift):
    """Per-channel y = x * scale + shift, then LeakyReLU(0.2), tiled over M.
    x is already (Mp, Np) with Mp % 8 == 0 and Np % 128 == 0 (no extra padding)."""
    m, n = x.shape
    tm = _pick_divisor_tile(m, 2048)
    return pl.pallas_call(
        _affine_act_kernel,
        out_shape=jax.ShapeDtypeStruct((m, n), x.dtype),
        grid=(m // tm,),
        in_specs=[
            pl.BlockSpec((tm, n), lambda i: (i, 0)),
            pl.BlockSpec((1, n), lambda i: (0, 0)),
            pl.BlockSpec((1, n), lambda i: (0, 0)),
        ],
        out_specs=pl.BlockSpec((tm, n), lambda i: (i, 0)),
        compiler_params=pltpu.CompilerParams(dimension_semantics=("parallel",)),
    )(x, scale.reshape(1, n).astype(jnp.float32),
      shift.reshape(1, n).astype(jnp.float32))


# ---------------------------------------------------------------------------
# im2col (glue, plain JAX)
# ---------------------------------------------------------------------------
def im2col(x_nhwc, k, s, p):
    n, h, w, c = x_nhwc.shape
    ho = (h + 2 * p - k) // s + 1
    wo = (w + 2 * p - k) // s + 1
    xp = jnp.pad(x_nhwc, ((0, 0), (p, p), (p, p), (0, 0)))
    patches = []
    for kh in range(k):
        for kw in range(k):
            patches.append(
                xp[:, kh:kh + (ho - 1) * s + 1:s, kw:kw + (wo - 1) * s + 1:s, :])
    cols = jnp.stack(patches, axis=3)              # (N, Ho, Wo, k*k, C)
    cols = cols.reshape(n * ho * wo, k * k * c)    # col order = (kh, kw, c_in)
    return cols, ho, wo


# ---------------------------------------------------------------------------
# PatchDiscriminator forward (Pallas-backed)
# ---------------------------------------------------------------------------
def patch_discriminator_forward(x_nchw, layers):
    # Activations travel between kernels as bf16 NHWC slabs (lane dim = channels).
    x = jnp.transpose(x_nchw, (0, 2, 3, 1)).astype(jnp.bfloat16)
    n = x.shape[0]
    # TODO(synk): gather the 4x4 conv taps in-kernel (pl.ANY HBM refs + halo
    # make_async_copy per output-row block) so the im2col slab (up to 16x activation
    # inflation for the stride-1 layers) never has to be materialized in HBM.
    for li, layer in enumerate(layers):
        w = layer["w"]                              # (Cout, Cin, 4, 4), PyTorch OIHW
        cout, cin, k, _ = w.shape
        cin_p = _round_up(cin, 8)                   # makes K = k*k*cin_p 128-aligned
        if cin_p != cin:                            # layer 1 only: pad the small input,
            x = jnp.pad(x, ((0, 0), (0, 0), (0, 0), (0, cin_p - cin)))  # not the cols slab
        cols, ho, wo = im2col(x, k, layer["s"], 1)  # bf16 (N*Ho*Wo, k*k*cin_p)
        m = cols.shape[0]

        w_t = jnp.transpose(w, (2, 3, 1, 0))        # (k, k, cin, cout)
        if cin_p != cin:
            w_t = jnp.pad(w_t, ((0, 0), (0, 0), (0, cin_p - cin), (0, 0)))
        cout_p = _round_up(cout, 128)               # lane-dense output stores
        w2 = w_t.reshape(k * k * cin_p, cout)
        if cout_p != cout:
            w2 = jnp.pad(w2, ((0, 0), (0, cout_p - cout)))

        if layer["norm"]:
            # Conv without bias (matches bias=not norm). Per-channel sum/sumsq come out
            # of the GEMM itself; training-mode BN (+act) is then a single affine pass.
            y_pad, s1, s2 = conv_gemm_stats(cols, w2)
            mean = s1[:cout] / m
            var = jnp.maximum(s2[:cout] / m - mean * mean, 0.0)   # biased var over (N,H,W)
            scale = layer["gamma"] * lax.rsqrt(var + BN_EPS)
            shift = layer["beta"] - mean * scale
            scale_p = jnp.pad(scale, (0, cout_p - cout))
            shift_p = jnp.pad(shift, (0, cout_p - cout))
            y_pad = affine_act(y_pad, scale_p, shift_p)
        else:
            out_dtype = jnp.float32 if li == len(layers) - 1 else jnp.bfloat16
            bias_p = jnp.pad(layer["b"], (0, cout_p - cout))
            y_pad = conv_gemm_bias_act(cols, w2, bias_p, act=layer["act"],
                                       out_dtype=out_dtype)
        x = y_pad[:m, :cout].reshape(n, ho, wo, cout)
    return jnp.transpose(x, (0, 3, 1, 2)).astype(jnp.float32)     # -> NCHW


# ---------------------------------------------------------------------------
# Deterministic parameter init (synthetic; shapes match the PyTorch module)
# ---------------------------------------------------------------------------
def init_params(key, input_c, num_filters=64, n_down=3):
    specs = [dict(ni=input_c, nf=num_filters, s=2, norm=False, act=True)]
    for i in range(n_down):
        specs.append(dict(ni=num_filters * 2 ** i, nf=num_filters * 2 ** (i + 1),
                          s=1 if i == n_down - 1 else 2, norm=True, act=True))
    specs.append(dict(ni=num_filters * 2 ** n_down, nf=1, s=1, norm=False, act=False))

    layers = []
    for spec in specs:
        key, kw, kb, kg, kbe = jax.random.split(key, 5)
        layer = dict(
            w=0.05 * jax.random.normal(kw, (spec["nf"], spec["ni"], 4, 4), jnp.float32),
            s=spec["s"], norm=spec["norm"], act=spec["act"], b=None,
        )
        if spec["norm"]:
            layer["gamma"] = 1.0 + 0.1 * jax.random.normal(kg, (spec["nf"],), jnp.float32)
            layer["beta"] = 0.1 * jax.random.normal(kbe, (spec["nf"],), jnp.float32)
        else:
            layer["b"] = 0.05 * jax.random.normal(kb, (spec["nf"],), jnp.float32)
        layers.append(layer)
    return layers


# ---------------------------------------------------------------------------
# Pure-JAX reference (for correctness check only)
# ---------------------------------------------------------------------------
def ref_forward(x_nchw, layers):
    y = x_nchw.astype(jnp.float32)
    for layer in layers:
        y = lax.conv_general_dilated(
            y, layer["w"], (layer["s"], layer["s"]), ((1, 1), (1, 1)),
            dimension_numbers=("NCHW", "OIHW", "NCHW"),
            precision=lax.Precision.HIGHEST)
        if layer["b"] is not None:
            y = y + layer["b"][None, :, None, None]
        if layer["norm"]:
            mean = jnp.mean(y, axis=(0, 2, 3), keepdims=True)
            var = jnp.mean(jnp.square(y - mean), axis=(0, 2, 3), keepdims=True)
            y = (y - mean) / jnp.sqrt(var + BN_EPS)
            y = y * layer["gamma"][None, :, None, None] + layer["beta"][None, :, None, None]
        if layer["act"]:
            y = jnp.where(y >= 0, y, NEG_SLOPE * y)
    return y


if __name__ == "__main__":
    key = jax.random.PRNGKey(0)
    kx, kp = jax.random.split(key)

    # Small but valid shapes: 32x32 input survives 3 stride-2 downsamples + two
    # stride-1 k=4 convs (32 -> 16 -> 8 -> 4 -> 3 -> 2).
    batch, input_c, hw = 2, 3, 32
    num_filters, n_down = 16, 3

    x = jax.random.normal(kx, (batch, input_c, hw, hw), jnp.float32)
    layers = init_params(kp, input_c, num_filters=num_filters, n_down=n_down)

    out = jax.block_until_ready(patch_discriminator_forward(x, layers))
    ref = jax.block_until_ready(ref_forward(x, layers))

    assert out.shape == ref.shape == (batch, 1, 2, 2), (out.shape, ref.shape)
    # bf16 MXU inputs with f32 accumulation: check relative error against f32 reference.
    rel_err = float(jnp.max(jnp.abs(out - ref)) / (jnp.max(jnp.abs(ref)) + 1e-8))
    assert rel_err < 5e-2, f"mismatch vs reference: rel_err={rel_err:.4f}"
    print("KERNEL_OK")
</pallas_src>

<mosaic_0001>
module attributes {stable_mosaic.version = 11 : i64} {
  func.func @_conv_bias_act_kernel(%arg0: i32, %arg1: memref<512x128xbf16, #tpu.memory_space<vmem>>, %arg2: memref<128x128xbf16, #tpu.memory_space<vmem>>, %arg3: memref<1x128xf32, #tpu.memory_space<vmem>>, %arg4: memref<512x128xbf16, #tpu.memory_space<vmem>>) attributes {dimension_semantics = [#tpu.dimension_semantics<parallel>], iteration_bounds = array<i64: 1>, scalar_prefetch = 0 : i64, scratch_operands = 0 : i64, tpu.core_type = #tpu.core_type<tc>, window_params = [{transform_indices = @transform_0, window_bounds = array<i64: 512, 128>}, {pipeline_mode = #tpu.pipeline_mode<synchronous>, transform_indices = @transform_1, window_bounds = array<i64: 128, 128>}, {pipeline_mode = #tpu.pipeline_mode<synchronous>, transform_indices = @transform_2, window_bounds = array<i64: 1, 128>}, {transform_indices = @transform_3, window_bounds = array<i64: 512, 128>}]} {
    %c0 = arith.constant 0 : index
    %c0_0 = arith.constant 0 : index
    %0 = vector.load %arg1[%c0, %c0_0] : memref<512x128xbf16, #tpu.memory_space<vmem>>, vector<512x128xbf16>
    %c0_1 = arith.constant 0 : index
    %c0_2 = arith.constant 0 : index
    %1 = vector.load %arg2[%c0_1, %c0_2] : memref<128x128xbf16, #tpu.memory_space<vmem>>, vector<128x128xbf16>
    %cst = arith.constant dense<0.000000e+00> : vector<512x128xf32>
    %2 = tpu.matmul %0, %1, %cst {dimension_numbers = #tpu.dot_dimension_numbers<[1], [0], [0], [1], [0, 0, 1, 1], [], []>} : vector<512x128xbf16>, vector<128x128xbf16>, vector<512x128xf32> -> vector<512x128xf32>
    %c0_3 = arith.constant 0 : index
    %c0_4 = arith.constant 0 : index
    %3 = vector.load %arg3[%c0_3, %c0_4] : memref<1x128xf32, #tpu.memory_space<vmem>>, vector<1x128xf32>
    %4 = vector.broadcast %3 : vector<1x128xf32> to vector<512x128xf32>
    %5 = arith.addf %2, %4 : vector<512x128xf32>
    %cst_5 = arith.constant 0.000000e+00 : f32
    %6 = vector.broadcast %cst_5 : f32 to vector<512x128xf32>
    %7 = arith.cmpf oge, %5, %6 : vector<512x128xf32>
    %cst_6 = arith.constant 2.000000e-01 : f32
    %8 = vector.broadcast %cst_6 : f32 to vector<512x128xf32>
    %9 = arith.mulf %8, %5 : vector<512x128xf32>
    %10 = arith.select %7, %5, %9 : vector<512x128xi1>, vector<512x128xf32>
    %11 = arith.truncf %10 : vector<512x128xf32> to vector<512x128xbf16>
    %c0_7 = arith.constant 0 : index
    %c0_8 = arith.constant 0 : index
    %12 = vector.load %arg4[%c0_7, %c0_8] : memref<512x128xbf16, #tpu.memory_space<vmem>>, vector<512x128xbf16>
    tpu.vector_store %arg4[%c0_7, %c0_8], %11 {strides = array<i32>} : memref<512x128xbf16, #tpu.memory_space<vmem>>, vector<512x128xbf16>,
    return
  }
  func.func @transform_0(%arg0: i32) -> (i32, i32) {
    %c0_i32 = arith.constant 0 : i32
    %c0_i32_0 = arith.constant 0 : i32
    return %arg0, %c0_i32 : i32, i32
  }
  func.func @transform_1(%arg0: i32) -> (i32, i32) {
    %c0_i32 = arith.constant 0 : i32
    %c0_i32_0 = arith.constant 0 : i32
    %c0_i32_1 = arith.constant 0 : i32
    return %c0_i32, %c0_i32_0 : i32, i32
  }
  func.func @transform_2(%arg0: i32) -> (i32, i32) {
    %c0_i32 = arith.constant 0 : i32
    %c0_i32_0 = arith.constant 0 : i32
    %c0_i32_1 = arith.constant 0 : i32
    return %c0_i32, %c0_i32_0 : i32, i32
  }
  func.func @transform_3(%arg0: i32) -> (i32, i32) {
    %c0_i32 = arith.constant 0 : i32
    %c0_i32_0 = arith.constant 0 : i32
    return %arg0, %c0_i32 : i32, i32
  }
}

</mosaic_0001>

<bundles_post_ra>
// kernel: tpu_custom_call.1
= control target key start
LH: loop header
LB: loop body
LE: loop exit
PB: predicated region body
PF: predicated region fallthrough
CT: control target
= control target key end

     0   :  { %8 = vsyncpa [#allocation3], 0  ;;  %s1952_s0 = inlined_call_operand.hbm [shape: bf16[512,128], index: 0, kind: input, shape index: {}]   ;;  %s1953_s1 = inlined_call_operand.hbm [shape: bf16[128,128], index: 1, kind: input, shape index: {}]   ;;  %s1954_s2 = inlined_call_operand.vmem [shape: f32[1,128], index: 2, kind: input, shape index: {}]   ;;  %s1955_s3 = inlined_call_operand.hbm [shape: bf16[512,128], index: 3, kind: output, shape index: {}]  }
   0x1   :  { %9 = vsyncpa [#allocation6], 0 }
   0x2   :  { %10 = vsyncpa [#allocation4], 0  ;;  %s1803_s12 = smov [#allocation2]   ;;  %s1731_s16 = scalar_lea.hbm %s1952_s0, 4096 }
   0x3   :  { %s16_s13 = sshll.u32 %s1803_s12, 4  ;;  %p1732_p0 = scmp.ne.s32.totalorder %s1952_s0, %s1731_s16  ;;  %s17_s13 = int_to_ptr.vmem [resolvable:$true] %s16_s13 }
   0x4   :  { %p1735_p1 = scmp.lt.u32.totalorder %s1731_s16, %s1952_s0 }
   0x6   :  { %p1737_p2 = pnand %p1735_p1, %p1732_p0 }
   0x8   :  { %1740 = shalt.err (!%p1737_p2)
}
   0x9   :  { %s1741_s21 = scalar_lea.vmem %s17_s13, 4096  ;;  %p1746_p4 = scmp.lt.s32.totalorder %s17_s13, %s17_s13 }
   0xa   :  { %p1742_p3 = scmp.ne.s32.totalorder %s17_s13, %s1741_s21  ;;  %p1747_p5 = scmp.lt.s32.totalorder %s1741_s21, %s1741_s21 }
   0xc   :  { %p1748_p6 = por %p1747_p5, %p1746_p4 }
   0xe   :  { %p1749_p7 = pnand %p1748_p6, %p1742_p3 }
  0x10   :  { %1752 = shalt.err (!%p1749_p7)
}
  0x11   :  { %s1804_s22 = smov 64   ;;  %s1805_s23 = smov 4  }
  0x12   :  { %22 = dma.hbm_to_vmem [thread:$0]  %s1952_s0, 4096, %s17_s13, [#allocation3], %s1804_s22, %s1804_s22, %s1805_s23  }
  0x13   :  { %s1806_s26 = smov [#allocation5]   ;;  %s1753_s30 = scalar_lea.hbm %s1953_s1, 1024 }
  0x14   :  { %s28_s27 = sshll.u32 %s1806_s26, 4  ;;  %p1754_p8 = scmp.ne.s32.totalorder %s1953_s1, %s1753_s30  ;;  %s29_s27 = int_to_ptr.vmem [resolvable:$true] %s28_s27 }
  0x15   :  { %p1757_p9 = scmp.lt.u32.totalorder %s1753_s30, %s1953_s1 }
  0x17   :  { %p1759_p10 = pnand %p1757_p9, %p1754_p8 }
  0x19   :  { %1762 = shalt.err (!%p1759_p10)
}
  0x1a   :  { %s1763_s8 = scalar_lea.vmem %s29_s27, 1024  ;;  %p1768_p12 = scmp.lt.s32.totalorder %s29_s27, %s29_s27 }
  0x1b   :  { %p1764_p11 = scmp.ne.s32.totalorder %s29_s27, %s1763_s8  ;;  %p1769_p13 = scmp.lt.s32.totalorder %s1763_s8, %s1763_s8 }
  0x1d   :  { %p1770_p0 = por %p1769_p13, %p1768_p12 }
  0x1f   :  { %p1771_p1 = pnand %p1770_p0, %p1764_p11 }
  0x21   :  { %1774 = shalt.err (!%p1771_p1)
}
  0x22   :  { %34 = dma.hbm_to_vmem [thread:$0]  %s1953_s1, 1024, %s29_s27, [#allocation6], %s1804_s22, %s1804_s22, %s1805_s23  }
  0x23   :  { %1797 = dma.done.wait [#allocation3], 4096  }
  0x24   :  { %1798 = vsyncadd [#allocation3], 4294963200 }
  0x25   :  { %1799 = dma.done.wait [#allocation6], 1024  }
  0x26   :  { %1800 = vsyncadd [#allocation6], 4294966272  ;;  %v1691_v0 = vld [vmem:[#allocation5] sm:$0xff]   ;;  %v1692_v1 = vld [vmem:[#allocation5 + $0x8] sm:$0xff]  }
  0x27   :  { %1590 = vmatprep.subr.bf16.mxu0 %v1691_v0  ;;  %1670 = vmatprep.subr.bf16.mxu1 %v1691_v0  ;;  %v1693_v2 = vld [vmem:[#allocation5 + $0x10] sm:$0xff]   ;;  %v1694_v3 = vld [vmem:[#allocation5 + $0x18] sm:$0xff]   ;;  %v1699_v4 = vld [vmem:[#allocation2] sm:$0xff]  }
  0x28   :  { %1591 = vmatpush3.bf16.msra.mxu0 %v1691_v0  ;;  %1678 = vmatpush3.bf16.msra.mxu1 %v1691_v0  ;;  %v1700_v5 = vld [vmem:[#allocation2 + $0x80] sm:$0xff]   ;;  %v1696_v7 = vld [vmem:[#allocation5 + $0x28] sm:$0xff]   ;;  %v1697_v8 = vld [vmem:[#allocation5 + $0x30] sm:$0xff]  }
  0x29   :  { %1592 = vmatprep.subr.bf16.mxu0 %v1692_v1  ;;  %1671 = vmatprep.subr.bf16.mxu1 %v1692_v1  ;;  %v1695_v6 = vld [vmem:[#allocation5 + $0x20] sm:$0xff]   ;;  %v1698_v9 = vld [vmem:[#allocation5 + $0x38] sm:$0xff]   ;;  %v1701_v10 = vld [vmem:[#allocation2 + $0x8] sm:$0xff]  }
  0x2a   :  { %1606 = vmatprep.mubr.bf16.mxu0 %v1699_v4  ;;  %1638 = vmatprep.mubr.bf16.mxu1 %v1700_v5  ;;  %v1702_v11 = vld [vmem:[#allocation2 + $0x88] sm:$0xff]   ;;  %v1703_v12 = vld [vmem:[#allocation2 + $0x10] sm:$0xff]   ;;  %v1705_v14 = vld [vmem:[#allocation2 + $0x18] sm:$0xff]  }
  0x2b   :  { %v1704_v13 = vld [vmem:[#allocation2 + $0x90] sm:$0xff]   ;;  %v1706_v15 = vld [vmem:[#allocation2 + $0x98] sm:$0xff]   ;;  %v1707_v16 = vld [vmem:[#allocation2 + $0x20] sm:$0xff]  }
  0x2c   :  { %1593 = vmatpush3.bf16.msra.mxu0 %v1692_v1  ;;  %1679 = vmatpush3.bf16.msra.mxu1 %v1692_v1  ;;  %v1708_v17 = vld [vmem:[#allocation2 + $0xa0] sm:$0xff]   ;;  %v1709_v18 = vld [vmem:[#allocation2 + $0x28] sm:$0xff]   ;;  %v1711_v20 = vld [vmem:[#allocation2 + $0x30] sm:$0xff]  }
  0x2d   :  { %1594 = vmatprep.subr.bf16.mxu0 %v1693_v2  ;;  %1672 = vmatprep.subr.bf16.mxu1 %v1693_v2  ;;  %v1710_v19 = vld [vmem:[#allocation2 + $0xa8] sm:$0xff]   ;;  %v1712_v21 = vld [vmem:[#allocation2 + $0xb0] sm:$0xff]   ;;  %v1713_v22 = vld [vmem:[#allocation2 + $0x38] sm:$0xff]  }
  0x2e   :  { %v1714_v23 = vld [vmem:[#allocation2 + $0xb8] sm:$0xff]   ;;  %v1715_v24 = vld [vmem:[#allocation2 + $0x40] sm:$0xff]   ;;  %v1717_v26 = vld [vmem:[#allocation2 + $0x48] sm:$0xff]  }
  0x2f   :  { %v1716_v25 = vld [vmem:[#allocation2 + $0xc0] sm:$0xff]   ;;  %v1718_v27 = vld [vmem:[#allocation2 + $0xc8] sm:$0xff]   ;;  %v1719_v28 = vld [vmem:[#allocation2 + $0x50] sm:$0xff]  }
  0x30   :  { %1595 = vmatpush3.bf16.msra.mxu0 %v1693_v2  ;;  %1680 = vmatpush3.bf16.msra.mxu1 %v1693_v2  ;;  %v1720_v29 = vld [vmem:[#allocation2 + $0xd0] sm:$0xff]   ;;  %v1721_v30 = vld [vmem:[#allocation2 + $0x58] sm:$0xff]   ;;  %v1723_v32 = vld [vmem:[#allocation2 + $0x60] sm:$0xff]  }
  0x31   :  { %1596 = vmatprep.subr.bf16.mxu0 %v1694_v3  ;;  %1673 = vmatprep.subr.bf16.mxu1 %v1694_v3  ;;  %v1722_v31 = vld [vmem:[#allocation2 + $0xd8] sm:$0xff]   ;;  %v1724_v33 = vld [vmem:[#allocation2 + $0xe0] sm:$0xff]   ;;  %v1725_v34 = vld [vmem:[#allocation2 + $0x68] sm:$0xff]  }
  0x32   :  { %v1726_v35 = vld [vmem:[#allocation2 + $0xe8] sm:$0xff]   ;;  %v1727_v36 = vld [vmem:[#allocation2 + $0x70] sm:$0xff]   ;;  %v1729_v38 = vld [vmem:[#allocation2 + $0x78] sm:$0xff]  }
  0x33   :  { %v1728_v37 = vld [vmem:[#allocation2 + $0xf0] sm:$0xff]   ;;  %v1730_v39 = vld [vmem:[#allocation2 + $0xf8] sm:$0xff]   ;;  %v1861_v40 = vld [vmem:[%s1954_s2] ss:$0 sm:$0xff]  ;;  %s1807_s2 = smov [#allocation7]  }
  0x34   :  { %1597 = vmatpush3.bf16.msra.mxu0 %v1694_v3  ;;  %1681 = vmatpush3.bf16.msra.mxu1 %v1694_v3  ;;  %s1177_s11 = sshll.u32 %s1807_s2, 4  ;;  %s1178_s11 = int_to_ptr.vmem [resolvable:$true] %s1177_s11 }
  0x35   :  { %1598 = vmatprep.subr.bf16.mxu0 %v1695_v6  ;;  %1674 = vmatprep.subr.bf16.mxu1 %v1695_v6  ;;  %s1775_s12 = scalar_lea.vmem %s1178_s11, 4096  ;;  %p1780_p3 = scmp.lt.s32.totalorder %s1178_s11, %s1178_s11 }
  0x36   :  { %p1776_p2 = scmp.ne.s32.totalorder %s1178_s11, %s1775_s12  ;;  %p1781_p4 = scmp.lt.s32.totalorder %s1775_s12, %s1775_s12 }
  0x38   :  { %1599 = vmatpush3.bf16.msra.mxu0 %v1695_v6  ;;  %1682 = vmatpush3.bf16.msra.mxu1 %v1695_v6  ;;  %p1782_p5 = por %p1781_p4, %p1780_p3 }
  0x39   :  { %1600 = vmatprep.subr.bf16.mxu0 %v1696_v7  ;;  %1675 = vmatprep.subr.bf16.mxu1 %v1696_v7 }
  0x3a   :  { %p1783_p6 = pnand %p1782_p5, %p1776_p2 }
  0x3c   :  { %1601 = vmatpush3.bf16.msra.mxu0 %v1696_v7  ;;  %1683 = vmatpush3.bf16.msra.mxu1 %v1696_v7 }
  0x3d   :  { %1602 = vmatprep.subr.bf16.mxu0 %v1697_v8  ;;  %1676 = vmatprep.subr.bf16.mxu1 %v1697_v8 }
  0x40   :  { %1603 = vmatpush3.bf16.msra.mxu0 %v1697_v8  ;;  %1684 = vmatpush3.bf16.msra.mxu1 %v1697_v8 }
  0x41   :  { %1604 = vmatprep.subr.bf16.mxu0 %v1698_v9  ;;  %1677 = vmatprep.subr.bf16.mxu1 %v1698_v9 }
  0x44   :  { %1605 = vmatpush3.bf16.msra.mxu0 %v1698_v9  ;;  %1685 = vmatpush3.bf16.msra.mxu1 %v1698_v9 }
  0x47   :  { %1607 = vmatmul.mubr.bf16.vlgmr.msra.gmra.mrb[0].mxu0 %v1701_v10  ;;  %1639 = vmatmul.mubr.bf16.vlgmr.msra.gmra.mrb[0].mxu1 %v1702_v11 }
  0x48   :  { %1610 = vmatprep.mubr.bf16.mxu0 %v1703_v12  ;;  %1642 = vmatprep.mubr.bf16.mxu1 %v1704_v13 }
  0x4f   :  { %1611 = vmatmul.mubr.bf16.gmra.mrb[4].mxu0 %v1705_v14  ;;  %1643 = vmatmul.mubr.bf16.gmra.mrb[4].mxu1 %v1706_v15 }
  0x50   :  { %1614 = vmatprep.mubr.bf16.mxu0 %v1707_v16  ;;  %1646 = vmatprep.mubr.bf16.mxu1 %v1708_v17 }
  0x57   :  { %1615 = vmatmul.mubr.bf16.gmra.mrb[8].mxu0 %v1709_v18  ;;  %1647 = vmatmul.mubr.bf16.gmra.mrb[8].mxu1 %v1710_v19 }
  0x58   :  { %1618 = vmatprep.mubr.bf16.mxu0 %v1711_v20  ;;  %1650 = vmatprep.mubr.bf16.mxu1 %v1712_v21 }
  0x5f   :  { %1619 = vmatmul.mubr.bf16.gmra.mrb[12].mxu0 %v1713_v22  ;;  %1651 = vmatmul.mubr.bf16.gmra.mrb[12].mxu1 %v1714_v23 }
  0x60   :  { %1622 = vmatprep.mubr.bf16.mxu0 %v1715_v24  ;;  %1654 = vmatprep.mubr.bf16.mxu1 %v1716_v25 }
  0x67   :  { %1623 = vmatmul.mubr.bf16.gmra.mrb[16].mxu0 %v1717_v26  ;;  %1655 = vmatmul.mubr.bf16.gmra.mrb[16].mxu1 %v1718_v27 }
  0x68   :  { %1626 = vmatprep.mubr.bf16.mxu0 %v1719_v28  ;;  %1658 = vmatprep.mubr.bf16.mxu1 %v1720_v29 }
  0x6f   :  { %1627 = vmatmul.mubr.bf16.gmra.mrb[20].mxu0 %v1721_v30  ;;  %1659 = vmatmul.mubr.bf16.gmra.mrb[20].mxu1 %v1722_v31 }
  0x70   :  { %1630 = vmatprep.mubr.bf16.mxu0 %v1723_v32  ;;  %1662 = vmatprep.mubr.bf16.mxu1 %v1724_v33 }
  0x77   :  { %1631 = vmatmul.mubr.bf16.gmra.mrb[24].mxu0 %v1725_v34  ;;  %1663 = vmatmul.mubr.bf16.gmra.mrb[24].mxu1 %v1726_v35 }
  0x78   :  { %1634 = vmatprep.mubr.bf16.mxu0 %v1727_v36  ;;  %1666 = vmatprep.mubr.bf16.mxu1 %v1728_v37 }
  0x7f   :  { %1635 = vmatmul.mubr.bf16.gmra.mrb[28].mxu0 %v1729_v38  ;;  %1667 = vmatmul.mubr.bf16.gmra.mrb[28].mxu1 %v1730_v39 }
 0x11a   :  { %v1608_v41 = vpop.f32.mrb[0].mxu0  ;;  %v1640_v42 = vpop.f32.mrb[0].mxu1 }
 0x11b   :  { %v414_v43 = vadd.f32 %v1608_v41, %v1861_v40  ;;  %v542_v44 = vadd.f32 %v1640_v42, %v1861_v40  ;;  %v405_v45 = vpop.f32.mrb[1].mxu0  ;;  %v533_v46 = vpop.f32.mrb[1].mxu1 }
 0x11c   :  { %v406_v47 = vadd.f32 %v1861_v40, %v405_v45  ;;  %v534_v48 = vadd.f32 %v1861_v40, %v533_v46  ;;  %v1609_v49 = vpop.f32.mrb[2].mxu0  ;;  %v1641_v50 = vpop.f32.mrb[2].mxu1 }
 0x11d   :  { %vm662_vm0 = vcmp.ge.f32.partialorder %v414_v43, 0.0  ;;  %v726_v51 = vmul.f32 0.2, %v414_v43  ;;  %vm694_vm1 = vcmp.ge.f32.partialorder %v542_v44, 0.0  ;;  %v758_v52 = vmul.f32 0.2, %v542_v44 }
 0x11e   :  { %vm660_vm2 = vcmp.ge.f32.partialorder %v406_v47, 0.0  ;;  %v724_v53 = vmul.f32 0.2, %v406_v47  ;;  %vm692_vm3 = vcmp.ge.f32.partialorder %v534_v48, 0.0  ;;  %v756_v54 = vmul.f32 0.2, %v534_v48 }
 0x11f   :  { %v417_v55 = vadd.f32 %v1609_v49, %v1861_v40  ;;  %v545_v56 = vadd.f32 %v1641_v50, %v1861_v40  ;;  %v408_v57 = vpop.f32.mrb[3].mxu0  ;;  %v536_v58 = vpop.f32.mrb[3].mxu1  ;;  %v790_v59 = vsel %vm662_vm0, %v414_v43, %v726_v51  ;;  %v822_v60 = vsel %vm694_vm1, %v542_v44, %v758_v52 }
 0x120   :  { %v409_v61 = vadd.f32 %v1861_v40, %v408_v57  ;;  %v537_v62 = vadd.f32 %v1861_v40, %v536_v58  ;;  %v788_v3 = vsel %vm660_vm2, %v406_v47, %v724_v53  ;;  %v820_v4 = vsel %vm692_vm3, %v534_v48, %v756_v54 }
 0x121   :  { %vm663_vm4 = vcmp.ge.f32.partialorder %v417_v55, 0.0  ;;  %v727_v63 = vmul.f32 0.2, %v417_v55  ;;  %vm695_vm5 = vcmp.ge.f32.partialorder %v545_v56, 0.0  ;;  %v759_v0 = vmul.f32 0.2, %v545_v56 }
 0x122   :  { %vm661_vm6 = vcmp.ge.f32.partialorder %v409_v61, 0.0  ;;  %v725_v1 = vmul.f32 0.2, %v409_v61  ;;  %vm693_vm7 = vcmp.ge.f32.partialorder %v537_v62, 0.0  ;;  %v757_v2 = vmul.f32 0.2, %v537_v62 }
 0x123   :  { %v791_v5 = vsel %vm663_vm4, %v417_v55, %v727_v63  ;;  %v823_v6 = vsel %vm695_vm5, %v545_v56, %v759_v0  ;;  %v1612_v7 = vpop.f32.mrb[4].mxu0  ;;  %v1644_v8 = vpop.f32.mrb[4].mxu1 }
 0x124   :  { %v1367_v9 = vpack.c.bf16 %v791_v5, %v790_v59  ;;  %v1447_v10 = vpack.c.bf16 %v823_v6, %v822_v60  ;;  %v789_v11 = vsel %vm661_vm6, %v409_v61, %v725_v1  ;;  %v821_v12 = vsel %vm693_vm7, %v537_v62, %v757_v2  ;;  %v421_v13 = vpop.f32.mrb[5].mxu0  ;;  %v549_v14 = vpop.f32.mrb[5].mxu1 }
 0x125   :  { %v1362_v15 = vpack.c.bf16 %v789_v11, %v788_v3  ;;  %v1442_v16 = vpack.c.bf16 %v821_v12, %v820_v4  ;;  %v430_v17 = vadd.f32 %v1612_v7, %v1861_v40  ;;  %v558_v18 = vadd.f32 %v1644_v8, %v1861_v40  ;;  %v1613_v19 = vpop.f32.mrb[6].mxu0  ;;  %v1645_v20 = vpop.f32.mrb[6].mxu1 }
 0x126   :  { %1519 = vst [vmem:[#allocation7 + $0x8] sm:$0xff] %v1367_v9   ;;  %1535 = vst [vmem:[#allocation7 + $0x88] sm:$0xff] %v1447_v10   ;;  %v422_v21 = vadd.f32 %v1861_v40, %v421_v13  ;;  %v550_v22 = vadd.f32 %v1861_v40, %v549_v14  ;;  %v433_v23 = vadd.f32 %v1613_v19, %v1861_v40  ;;  %v424_v25 = vpop.f32.mrb[7].mxu0  ;;  %v552_v26 = vpop.f32.mrb[7].mxu1 }
 0x127   :  { %v561_v24 = vadd.f32 %v1645_v20, %v1861_v40  ;;  %1363 = vst [vmem:[#allocation7] sm:$0xff] %v1362_v15   ;;  %1534 = vst [vmem:[#allocation7 + $0x80] sm:$0xff] %v1442_v16   ;;  %vm666_vm8 = vcmp.ge.f32.partialorder %v430_v17, 0.0  ;;  %v730_v27 = vmul.f32 0.2, %v430_v17  ;;  %vm698_vm9 = vcmp.ge.f32.partialorder %v558_v18, 0.0 }
 0x128   :  { %v762_v28 = vmul.f32 0.2, %v558_v18  ;;  %vm664_vm10 = vcmp.ge.f32.partialorder %v422_v21, 0.0  ;;  %v728_v29 = vmul.f32 0.2, %v422_v21  ;;  %vm696_vm11 = vcmp.ge.f32.partialorder %v550_v22, 0.0 }
 0x129   :  { %v760_v30 = vmul.f32 0.2, %v550_v22  ;;  %v794_v31 = vsel %vm666_vm8, %v430_v17, %v730_v27  ;;  %vm667_vm12 = vcmp.ge.f32.partialorder %v433_v23, 0.0  ;;  %v731_v33 = vmul.f32 0.2, %v433_v23 }
 0x12a   :  { %v826_v32 = vsel %vm698_vm9, %v558_v18, %v762_v28  ;;  %v792_v34 = vsel %vm664_vm10, %v422_v21, %v728_v29  ;;  %vm699_vm13 = vcmp.ge.f32.partialorder %v561_v24, 0.0  ;;  %v763_v36 = vmul.f32 0.2, %v561_v24  ;;  %v1616_v37 = vpop.f32.mrb[8].mxu0  ;;  %v1648_v38 = vpop.f32.mrb[8].mxu1 }
 0x12b   :  { %v824_v35 = vsel %vm696_vm11, %v550_v22, %v760_v30  ;;  %v795_v39 = vsel %vm667_vm12, %v433_v23, %v731_v33  ;;  %v425_v41 = vadd.f32 %v1861_v40, %v424_v25  ;;  %v553_v42 = vadd.f32 %v1861_v40, %v552_v26  ;;  %v437_v44 = vpop.f32.mrb[9].mxu0  ;;  %v565_v45 = vpop.f32.mrb[9].mxu1 }
 0x12c   :  { %v446_v43 = vadd.f32 %v1616_v37, %v1861_v40  ;;  %v1377_v46 = vpack.c.bf16 %v795_v39, %v794_v31  ;;  %v827_v47 = vsel %vm699_vm13, %v561_v24, %v763_v36  ;;  %v574_v48 = vadd.f32 %v1648_v38, %v1861_v40  ;;  %v1617_v50 = vpop.f32.mrb[10].mxu0  ;;  %v1649_v51 = vpop.f32.mrb[10].mxu1 }
 0x12d   :  { %v438_v49 = vadd.f32 %v1861_v40, %v437_v44  ;;  %v1457_v52 = vpack.c.bf16 %v827_v47, %v826_v32  ;;  %vm665_vm14 = vcmp.ge.f32.partialorder %v425_v41, 0.0  ;;  %v729_v53 = vmul.f32 0.2, %v425_v41  ;;  %v440_v54 = vpop.f32.mrb[11].mxu0  ;;  %v568_v55 = vpop.f32.mrb[11].mxu1 }
 0x12e   :  { %vm697_vm15 = vcmp.ge.f32.partialorder %v553_v42, 0.0  ;;  %1521 = vst [vmem:[#allocation7 + $0x18] sm:$0xff] %v1377_v46   ;;  %v761_v56 = vmul.f32 0.2, %v553_v42  ;;  %vm670_vm0 = vcmp.ge.f32.partialorder %v446_v43, 0.0  ;;  %vm702_vm1 = vcmp.ge.f32.partialorder %v574_v48, 0.0 }
 0x12f   :  { %v734_v57 = vmul.f32 0.2, %v446_v43  ;;  %1537 = vst [vmem:[#allocation7 + $0x98] sm:$0xff] %v1457_v52   ;;  %v793_v58 = vsel %vm665_vm14, %v425_v41, %v729_v53  ;;  %v766_v59 = vmul.f32 0.2, %v574_v48  ;;  %vm668_vm2 = vcmp.ge.f32.partialorder %v438_v49, 0.0 }
 0x130   :  { %v732_v60 = vmul.f32 0.2, %v438_v49  ;;  %v1372_v61 = vpack.c.bf16 %v793_v58, %v792_v34  ;;  %v825_v62 = vsel %vm697_vm15, %v553_v42, %v761_v56  ;;  %v566_v0 = vadd.f32 %v1861_v40, %v565_v45 }
 0x131   :  { %v798_v63 = vsel %vm670_vm0, %v446_v43, %v734_v57  ;;  %v1452_v1 = vpack.c.bf16 %v825_v62, %v824_v35  ;;  %v830_v2 = vsel %vm702_vm1, %v574_v48, %v766_v59  ;;  %v449_v4 = vadd.f32 %v1617_v50, %v1861_v40 }
 0x132   :  { %v796_v3 = vsel %vm668_vm2, %v438_v49, %v732_v60  ;;  %1520 = vst [vmem:[#allocation7 + $0x10] sm:$0xff] %v1372_v61   ;;  %vm700_vm3 = vcmp.ge.f32.partialorder %v566_v0, 0.0  ;;  %v764_v5 = vmul.f32 0.2, %v566_v0  ;;  %v577_v6 = vadd.f32 %v1649_v51, %v1861_v40  ;;  %v1620_v8 = vpop.f32.mrb[12].mxu0  ;;  %v1652_v9 = vpop.f32.mrb[12].mxu1 }
 0x133   :  { %v441_v7 = vadd.f32 %v1861_v40, %v440_v54  ;;  %1536 = vst [vmem:[#allocation7 + $0x90] sm:$0xff] %v1452_v1   ;;  %vm671_vm4 = vcmp.ge.f32.partialorder %v449_v4, 0.0  ;;  %v735_v10 = vmul.f32 0.2, %v449_v4  ;;  %v569_v11 = vadd.f32 %v1861_v40, %v568_v55  ;;  %v453_v13 = vpop.f32.mrb[13].mxu0  ;;  %v581_v14 = vpop.f32.mrb[13].mxu1 }
 0x134   :  { %v462_v12 = vadd.f32 %v1620_v8, %v1861_v40  ;;  %v828_v15 = vsel %vm700_vm3, %v566_v0, %v764_v5  ;;  %vm703_vm5 = vcmp.ge.f32.partialorder %v577_v6, 0.0  ;;  %v767_v16 = vmul.f32 0.2, %v577_v6  ;;  %v1621_v17 = vpop.f32.mrb[14].mxu0  ;;  %v1653_v18 = vpop.f32.mrb[14].mxu1 }
 0x135   :  { %vm669_vm6 = vcmp.ge.f32.partialorder %v441_v7, 0.0  ;;  %v799_v19 = vsel %vm671_vm4, %v449_v4, %v735_v10  ;;  %v733_v20 = vmul.f32 0.2, %v441_v7  ;;  %vm701_vm7 = vcmp.ge.f32.partialorder %v569_v11, 0.0  ;;  %v456_v22 = vpop.f32.mrb[15].mxu0  ;;  %v584_v26 = vpop.f32.mrb[15].mxu1 }
 0x136   :  { %v765_v21 = vmul.f32 0.2, %v569_v11  ;;  %v1387_v23 = vpack.c.bf16 %v799_v19, %v798_v63  ;;  %v831_v24 = vsel %vm703_vm5, %v577_v6, %v767_v16  ;;  %vm674_vm8 = vcmp.ge.f32.partialorder %v462_v12, 0.0 }
 0x137   :  { %v738_v25 = vmul.f32 0.2, %v462_v12  ;;  %v1467_v27 = vpack.c.bf16 %v831_v24, %v830_v2  ;;  %v797_v28 = vsel %vm669_vm6, %v441_v7, %v733_v20  ;;  %v590_v30 = vadd.f32 %v1652_v9, %v1861_v40 }
 0x138   :  { %v829_v29 = vsel %vm701_vm7, %v569_v11, %v765_v21  ;;  %1523 = vst [vmem:[#allocation7 + $0x28] sm:$0xff] %v1387_v23   ;;  %v1382_v31 = vpack.c.bf16 %v797_v28, %v796_v3  ;;  %v454_v34 = vadd.f32 %v1861_v40, %v453_v13  ;;  %v582_v36 = vadd.f32 %v1861_v40, %v581_v14 }
 0x139   :  { %v1462_v32 = vpack.c.bf16 %v829_v29, %v828_v15  ;;  %v802_v33 = vsel %vm674_vm8, %v462_v12, %v738_v25  ;;  %1539 = vst [vmem:[#allocation7 + $0xa8] sm:$0xff] %v1467_v27   ;;  %vm706_vm9 = vcmp.ge.f32.partialorder %v590_v30, 0.0  ;;  %v770_v35 = vmul.f32 0.2, %v590_v30 }
 0x13a   :  { %v465_v37 = vadd.f32 %v1621_v17, %v1861_v40  ;;  %1522 = vst [vmem:[#allocation7 + $0x20] sm:$0xff] %v1382_v31   ;;  %vm672_vm10 = vcmp.ge.f32.partialorder %v454_v34, 0.0  ;;  %v736_v38 = vmul.f32 0.2, %v454_v34  ;;  %v593_v39 = vadd.f32 %v1653_v18, %v1861_v40  ;;  %v1624_v42 = vpop.f32.mrb[16].mxu0  ;;  %v1656_v43 = vpop.f32.mrb[16].mxu1 }
 0x13b   :  { %1538 = vst [vmem:[#allocation7 + $0xa0] sm:$0xff] %v1462_v32   ;;  %v457_v41 = vadd.f32 %v1861_v40, %v456_v22  ;;  %v834_v44 = vsel %vm706_vm9, %v590_v30, %v770_v35  ;;  %vm704_vm11 = vcmp.ge.f32.partialorder %v582_v36, 0.0  ;;  %v768_v45 = vmul.f32 0.2, %v582_v36  ;;  %v469_v46 = vpop.f32.mrb[17].mxu0  ;;  %v597_v47 = vpop.f32.mrb[17].mxu1 }
 0x13c   :  { %vm675_vm12 = vcmp.ge.f32.partialorder %v465_v37, 0.0  ;;  %v800_v48 = vsel %vm672_vm10, %v454_v34, %v736_v38  ;;  %v739_v49 = vmul.f32 0.2, %v465_v37  ;;  %vm707_vm13 = vcmp.ge.f32.partialorder %v593_v39, 0.0  ;;  %v1625_v51 = vpop.f32.mrb[18].mxu0  ;;  %v1657_v55 = vpop.f32.mrb[18].mxu1 }
 0x13d   :  { %v771_v50 = vmul.f32 0.2, %v593_v39  ;;  %v832_v52 = vsel %vm704_vm11, %v582_v36, %v768_v45  ;;  %vm673_vm14 = vcmp.ge.f32.partialorder %v457_v41, 0.0  ;;  %v737_v53 = vmul.f32 0.2, %v457_v41  ;;  %v472_v56 = vpop.f32.mrb[19].mxu0 }
 0x13e   :  { %v585_v54 = vadd.f32 %v1861_v40, %v584_v26  ;;  %v803_v57 = vsel %vm675_vm12, %v465_v37, %v739_v49  ;;  %v478_v59 = vadd.f32 %v1624_v42, %v1861_v40  ;;  %v606_v60 = vadd.f32 %v1656_v43, %v1861_v40  ;;  %v600_v61 = vpop.f32.mrb[19].mxu1 }
 0x13f   :  { %v835_v58 = vsel %vm707_vm13, %v593_v39, %v771_v50  ;;  %v1397_v62 = vpack.c.bf16 %v803_v57, %v802_v33  ;;  %v801_v0 = vsel %vm673_vm14, %v457_v41, %v737_v53  ;;  %v470_v5 = vadd.f32 %v1861_v40, %v469_v46 }
 0x140   :  { %v1477_v63 = vpack.c.bf16 %v835_v58, %v834_v44  ;;  %vm705_vm15 = vcmp.ge.f32.partialorder %v585_v54, 0.0  ;;  %v1392_v1 = vpack.c.bf16 %v801_v0, %v800_v48  ;;  %v769_v2 = vmul.f32 0.2, %v585_v54 }
 0x141   :  { %vm678_vm0 = vcmp.ge.f32.partialorder %v478_v59, 0.0  ;;  %v742_v3 = vmul.f32 0.2, %v478_v59  ;;  %1525 = vst [vmem:[#allocation7 + $0x38] sm:$0xff] %v1397_v62   ;;  %vm710_vm1 = vcmp.ge.f32.partialorder %v606_v60, 0.0  ;;  %v598_v6 = vadd.f32 %v1861_v40, %v597_v47 }
 0x142   :  { %1541 = vst [vmem:[#allocation7 + $0xb8] sm:$0xff] %v1477_v63   ;;  %v774_v4 = vmul.f32 0.2, %v606_v60  ;;  %1524 = vst [vmem:[#allocation7 + $0x30] sm:$0xff] %v1392_v1   ;;  %v833_v7 = vsel %vm705_vm15, %v585_v54, %v769_v2  ;;  %v481_v9 = vadd.f32 %v1625_v51, %v1861_v40  ;;  %v609_v10 = vadd.f32 %v1657_v55, %v1861_v40  ;;  %v1628_v11 = vpop.f32.mrb[20].mxu0  ;;  %v1660_v12 = vpop.f32.mrb[20].mxu1 }
 0x143   :  { %v806_v8 = vsel %vm678_vm0, %v478_v59, %v742_v3  ;;  %v1472_v13 = vpack.c.bf16 %v833_v7, %v832_v52  ;;  %vm676_vm2 = vcmp.ge.f32.partialorder %v470_v5, 0.0  ;;  %v740_v15 = vmul.f32 0.2, %v470_v5  ;;  %v485_v16 = vpop.f32.mrb[21].mxu0  ;;  %v613_v17 = vpop.f32.mrb[21].mxu1 }
 0x144   :  { %v838_v14 = vsel %vm710_vm1, %v606_v60, %v774_v4  ;;  %vm708_vm3 = vcmp.ge.f32.partialorder %v598_v6, 0.0  ;;  %v772_v18 = vmul.f32 0.2, %v598_v6  ;;  %vm679_vm4 = vcmp.ge.f32.partialorder %v481_v9, 0.0  ;;  %v1629_v23 = vpop.f32.mrb[22].mxu0  ;;  %v1661_v24 = vpop.f32.mrb[22].mxu1 }
 0x145   :  { %v743_v19 = vmul.f32 0.2, %v481_v9  ;;  %1540 = vst [vmem:[#allocation7 + $0xb0] sm:$0xff] %v1472_v13   ;;  %v804_v20 = vsel %vm676_vm2, %v470_v5, %v740_v15  ;;  %vm711_vm5 = vcmp.ge.f32.partialorder %v609_v10, 0.0  ;;  %v775_v21 = vmul.f32 0.2, %v609_v10 }
 0x146   :  { %v473_v22 = vadd.f32 %v1861_v40, %v472_v56  ;;  %v836_v25 = vsel %vm708_vm3, %v598_v6, %v772_v18  ;;  %v601_v27 = vadd.f32 %v1861_v40, %v600_v61  ;;  %v494_v28 = vadd.f32 %v1628_v11, %v1861_v40  ;;  %v488_v29 = vpop.f32.mrb[23].mxu0  ;;  %v616_v30 = vpop.f32.mrb[23].mxu1 }
 0x147   :  { %v807_v26 = vsel %vm679_vm4, %v481_v9, %v743_v19  ;;  %v839_v32 = vsel %vm711_vm5, %v609_v10, %v775_v21  ;;  %v622_v38 = vadd.f32 %v1660_v12, %v1861_v40  ;;  %v486_v39 = vadd.f32 %v1861_v40, %v485_v16 }
 0x148   :  { %v1407_v31 = vpack.c.bf16 %v807_v26, %v806_v8  ;;  %vm677_vm6 = vcmp.ge.f32.partialorder %v473_v22, 0.0  ;;  %v741_v33 = vmul.f32 0.2, %v473_v22  ;;  %v1487_v34 = vpack.c.bf16 %v839_v32, %v838_v14 }
 0x149   :  { %vm709_vm7 = vcmp.ge.f32.partialorder %v601_v27, 0.0  ;;  %v773_v35 = vmul.f32 0.2, %v601_v27  ;;  %vm682_vm8 = vcmp.ge.f32.partialorder %v494_v28, 0.0  ;;  %v746_v37 = vmul.f32 0.2, %v494_v28 }
 0x14a   :  { %1527 = vst [vmem:[#allocation7 + $0x48] sm:$0xff] %v1407_v31   ;;  %v805_v36 = vsel %vm677_vm6, %v473_v22, %v741_v33  ;;  %1543 = vst [vmem:[#allocation7 + $0xc8] sm:$0xff] %v1487_v34   ;;  %v614_v43 = vadd.f32 %v1861_v40, %v613_v17  ;;  %v497_v44 = vadd.f32 %v1629_v23, %v1861_v40  ;;  %v1632_v45 = vpop.f32.mrb[24].mxu0  ;;  %v1664_v46 = vpop.f32.mrb[24].mxu1  ;;  %vm714_vm9 = vcmp.ge.f32.partialorder %v622_v38, 0.0 }
 0x14b   :  { %v1402_v41 = vpack.c.bf16 %v805_v36, %v804_v20  ;;  %v837_v42 = vsel %vm709_vm7, %v601_v27, %v773_v35  ;;  %v778_v48 = vmul.f32 0.2, %v622_v38  ;;  %v501_v49 = vpop.f32.mrb[25].mxu0  ;;  %v629_v50 = vpop.f32.mrb[25].mxu1  ;;  %v810_v51 = vsel %vm682_vm8, %v494_v28, %v746_v37 }
 0x14c   :  { %v1482_v47 = vpack.c.bf16 %v837_v42, %v836_v25  ;;  %vm680_vm10 = vcmp.ge.f32.partialorder %v486_v39, 0.0  ;;  %v744_v52 = vmul.f32 0.2, %v486_v39  ;;  %v776_v53 = vmul.f32 0.2, %v614_v43  ;;  %v1633_v56 = vpop.f32.mrb[26].mxu0 }
 0x14d   :  { %1526 = vst [vmem:[#allocation7 + $0x40] sm:$0xff] %v1402_v41   ;;  %vm712_vm11 = vcmp.ge.f32.partialorder %v614_v43, 0.0  ;;  %vm683_vm12 = vcmp.ge.f32.partialorder %v497_v44, 0.0  ;;  %v747_v54 = vmul.f32 0.2, %v497_v44  ;;  %v625_v55 = vadd.f32 %v1661_v24, %v1861_v40  ;;  %v1665_v57 = vpop.f32.mrb[26].mxu1 }
 0x14e   :  { %1542 = vst [vmem:[#allocation7 + $0xc0] sm:$0xff] %v1482_v47   ;;  %v842_v58 = vsel %vm714_vm9, %v622_v38, %v778_v48  ;;  %v808_v59 = vsel %vm680_vm10, %v486_v39, %v744_v52  ;;  %v489_v60 = vadd.f32 %v1861_v40, %v488_v29  ;;  %v617_v61 = vadd.f32 %v1861_v40, %v616_v30  ;;  %v504_v62 = vpop.f32.mrb[27].mxu0  ;;  %v632_v63 = vpop.f32.mrb[27].mxu1 }
 0x14f   :  { %v811_v0 = vsel %vm683_vm12, %v497_v44, %v747_v54  ;;  %vm715_vm13 = vcmp.ge.f32.partialorder %v625_v55, 0.0  ;;  %v779_v1 = vmul.f32 0.2, %v625_v55  ;;  %v510_v2 = vadd.f32 %v1632_v45, %v1861_v40 }
 0x150   :  { %v1417_v3 = vpack.c.bf16 %v811_v0, %v810_v51  ;;  %vm681_vm14 = vcmp.ge.f32.partialorder %v489_v60, 0.0  ;;  %v745_v4 = vmul.f32 0.2, %v489_v60  ;;  %vm713_vm15 = vcmp.ge.f32.partialorder %v617_v61, 0.0 }
 0x151   :  { %v843_v5 = vsel %vm715_vm13, %v625_v55, %v779_v1  ;;  %v777_v6 = vmul.f32 0.2, %v617_v61  ;;  %vm686_vm0 = vcmp.ge.f32.partialorder %v510_v2, 0.0  ;;  %v750_v7 = vmul.f32 0.2, %v510_v2 }
 0x152   :  { %1529 = vst [vmem:[#allocation7 + $0x58] sm:$0xff] %v1417_v3   ;;  %v1497_v8 = vpack.c.bf16 %v843_v5, %v842_v58  ;;  %v809_v9 = vsel %vm681_vm14, %v489_v60, %v745_v4  ;;  %v638_v10 = vadd.f32 %v1664_v46, %v1861_v40  ;;  %v502_v11 = vadd.f32 %v1861_v40, %v501_v49  ;;  %v1636_v12 = vpop.f32.mrb[28].mxu0  ;;  %v1668_v13 = vpop.f32.mrb[28].mxu1 }
 0x153   :  { %v840_v14 = vsel %vm712_vm11, %v614_v43, %v776_v53  ;;  %v1412_v15 = vpack.c.bf16 %v809_v9, %v808_v59  ;;  %v841_v16 = vsel %vm713_vm15, %v617_v61, %v777_v6  ;;  %v630_v17 = vadd.f32 %v1861_v40, %v629_v50  ;;  %v517_v18 = vpop.f32.mrb[29].mxu0  ;;  %v645_v19 = vpop.f32.mrb[29].mxu1 }
 0x154   :  { %1545 = vst [vmem:[#allocation7 + $0xd8] sm:$0xff] %v1497_v8   ;;  %v1492_v20 = vpack.c.bf16 %v841_v16, %v840_v14  ;;  %vm718_vm1 = vcmp.ge.f32.partialorder %v638_v10, 0.0  ;;  %v782_v21 = vmul.f32 0.2, %v638_v10  ;;  %vm684_vm2 = vcmp.ge.f32.partialorder %v502_v11, 0.0  ;;  %v1637_v22 = vpop.f32.mrb[30].mxu0 }
 0x155   :  { %v1669_v23 = vpop.f32.mrb[30].mxu1  ;;  %1528 = vst [vmem:[#allocation7 + $0x50] sm:$0xff] %v1412_v15   ;;  %v814_v24 = vsel %vm686_vm0, %v510_v2, %v750_v7  ;;  %v748_v25 = vmul.f32 0.2, %v502_v11  ;;  %vm716_vm3 = vcmp.ge.f32.partialorder %v630_v17, 0.0  ;;  %v513_v26 = vadd.f32 %v1633_v56, %v1861_v40  ;;  %v520_v27 = vpop.f32.mrb[31].mxu0 }
 0x156   :  { %1544 = vst [vmem:[#allocation7 + $0xd0] sm:$0xff] %v1492_v20   ;;  %v780_v28 = vmul.f32 0.2, %v630_v17  ;;  %v641_v29 = vadd.f32 %v1665_v57, %v1861_v40  ;;  %v505_v30 = vadd.f32 %v1861_v40, %v504_v62  ;;  %v633_v31 = vadd.f32 %v1861_v40, %v632_v63  ;;  %v648_v32 = vpop.f32.mrb[31].mxu1 }
 0x157   :  { %v846_v33 = vsel %vm718_vm1, %v638_v10, %v782_v21  ;;  %v812_v34 = vsel %vm684_vm2, %v502_v11, %v748_v25  ;;  %vm687_vm4 = vcmp.ge.f32.partialorder %v513_v26, 0.0  ;;  %v751_v35 = vmul.f32 0.2, %v513_v26 }
 0x158   :  { %vm719_vm5 = vcmp.ge.f32.partialorder %v641_v29, 0.0  ;;  %v783_v36 = vmul.f32 0.2, %v641_v29  ;;  %vm685_vm6 = vcmp.ge.f32.partialorder %v505_v30, 0.0  ;;  %v749_v37 = vmul.f32 0.2, %v505_v30 }
 0x159   :  { %v815_v38 = vsel %vm687_vm4, %v513_v26, %v751_v35  ;;  %vm717_vm7 = vcmp.ge.f32.partialorder %v633_v31, 0.0  ;;  %v781_v39 = vmul.f32 0.2, %v633_v31  ;;  %v526_v41 = vadd.f32 %v1636_v12, %v1861_v40 }
 0x15a   :  { %v1427_v42 = vpack.c.bf16 %v815_v38, %v814_v24  ;;  %v847_v43 = vsel %vm719_vm5, %v641_v29, %v783_v36  ;;  %v813_v44 = vsel %vm685_vm6, %v505_v30, %v749_v37  ;;  %v654_v45 = vadd.f32 %v1668_v13, %v1861_v40 }
 0x15b   :  { %v844_v46 = vsel %vm716_vm3, %v630_v17, %v780_v28  ;;  %v1507_v47 = vpack.c.bf16 %v847_v43, %v846_v33  ;;  %v1422_v48 = vpack.c.bf16 %v813_v44, %v812_v34  ;;  %v845_v49 = vsel %vm717_vm7, %v633_v31, %v781_v39 }
 0x15c   :  { %1531 = vst [vmem:[#allocation7 + $0x68] sm:$0xff] %v1427_v42   ;;  %v1502_v50 = vpack.c.bf16 %v845_v49, %v844_v46  ;;  %vm690_vm8 = vcmp.ge.f32.partialorder %v526_v41, 0.0  ;;  %v754_v51 = vmul.f32 0.2, %v526_v41  ;;  %v786_v52 = vmul.f32 0.2, %v654_v45 }
 0x15d   :  { %1547 = vst [vmem:[#allocation7 + $0xe8] sm:$0xff] %v1507_v47   ;;  %1530 = vst [vmem:[#allocation7 + $0x60] sm:$0xff] %v1422_v48   ;;  %v518_v53 = vadd.f32 %v1861_v40, %v517_v18  ;;  %v646_v54 = vadd.f32 %v1861_v40, %v645_v19  ;;  %v529_v55 = vadd.f32 %v1637_v22, %v1861_v40  ;;  %vm722_vm9 = vcmp.ge.f32.partialorder %v654_v45, 0.0 }
 0x15e   :  { %v657_v56 = vadd.f32 %v1669_v23, %v1861_v40  ;;  %1546 = vst [vmem:[#allocation7 + $0xe0] sm:$0xff] %v1502_v50   ;;  %v521_v57 = vadd.f32 %v1861_v40, %v520_v27  ;;  %v649_v58 = vadd.f32 %v1861_v40, %v648_v32  ;;  %v818_v59 = vsel %vm690_vm8, %v526_v41, %v754_v51 }
 0x15f   :  { %vm688_vm10 = vcmp.ge.f32.partialorder %v518_v53, 0.0  ;;  %v752_v60 = vmul.f32 0.2, %v518_v53  ;;  %v784_v61 = vmul.f32 0.2, %v646_v54  ;;  %vm691_vm11 = vcmp.ge.f32.partialorder %v529_v55, 0.0 }
 0x160   :  { %v755_v62 = vmul.f32 0.2, %v529_v55  ;;  %vm723_vm12 = vcmp.ge.f32.partialorder %v657_v56, 0.0  ;;  %v787_v63 = vmul.f32 0.2, %v657_v56  ;;  %v850_v0 = vsel %vm722_vm9, %v654_v45, %v786_v52 }
 0x161   :  { %vm720_vm13 = vcmp.ge.f32.partialorder %v646_v54, 0.0  ;;  %vm689_vm14 = vcmp.ge.f32.partialorder %v521_v57, 0.0  ;;  %v753_v1 = vmul.f32 0.2, %v521_v57  ;;  %vm721_vm15 = vcmp.ge.f32.partialorder %v649_v58, 0.0 }
 0x162   :  { %v819_v2 = vsel %vm691_vm11, %v529_v55, %v755_v62  ;;  %v851_v3 = vsel %vm723_vm12, %v657_v56, %v787_v63  ;;  %v785_v4 = vmul.f32 0.2, %v649_v58  ;;  %v816_v40 = vsel %vm688_vm10, %v518_v53, %v752_v60 }
 0x163   :  { %v1437_v5 = vpack.c.bf16 %v819_v2, %v818_v59  ;;  %v1517_v6 = vpack.c.bf16 %v851_v3, %v850_v0  ;;  %v817_v7 = vsel %vm689_vm14, %v521_v57, %v753_v1  ;;  %v848_v8 = vsel %vm720_vm13, %v646_v54, %v784_v61 }
 0x164   :  { %v1432_v9 = vpack.c.bf16 %v817_v7, %v816_v40  ;;  %v849_v10 = vsel %vm721_vm15, %v649_v58, %v785_v4 }
 0x165   :  { %1533 = vst [vmem:[#allocation7 + $0x78] sm:$0xff] %v1437_v5   ;;  %1549 = vst [vmem:[#allocation7 + $0xf8] sm:$0xff] %v1517_v6   ;;  %v1512_v11 = vpack.c.bf16 %v849_v10, %v848_v8 }
 0x166   :  { %1532 = vst [vmem:[#allocation7 + $0x70] sm:$0xff] %v1432_v9  }
 0x167   :  { %1548 = vst [vmem:[#allocation7 + $0xf0] sm:$0xff] %v1512_v11  }
 0x168   :  { %1786 = shalt.err (!%p1783_p6)
}
 0x169   :  { %s1787_s15 = scalar_lea.hbm %s1955_s3, 4096 }
 0x16a   :  { %p1788_p7 = scmp.ne.s32.totalorder %s1955_s3, %s1787_s15  ;;  %p1791_p8 = scmp.lt.u32.totalorder %s1787_s15, %s1955_s3 }
 0x16c   :  { %p1793_p9 = pnand %p1791_p8, %p1788_p7 }
 0x16e   :  { %1796 = shalt.err (!%p1793_p9)
}
 0x16f   :  { %1183 = dma.vmem_to_hbm [thread:$0]  %s1178_s11, 4096, %s1955_s3, [#allocation4], %s1804_s22, %s1804_s22, %s1805_s23  }
 0x170   :  { %1801 = dma.done.wait [#allocation4], 4096  }
 0x171   :  { %1802 = vsyncadd [#allocation4], 4294963200 }
 0x172   :  { %1187 = vsyncpa [#allocation3], 1 }
 0x173   :  { %1188 = vsyncpa [#allocation6], 1 }
 0x174   :  { %1189 = vsyncpa [#allocation4], 1 }

</bundles_post_ra>
